<compile_context>
chip_gen: v7x
topology: tpu7x:2x2x1
jax: 0.10.0
libtpu: 0.0.40
codegen_flags: <defaults>
</compile_context>

<pallas_src>
import jax
import jax.numpy as jnp
from jax.experimental import pallas as pl
from jax.experimental.pallas import tpu as pltpu

IN_DIM = 312
IN_PAD = 320           # 312 padded to a sublane/DMA-friendly size (full-array last dim)
HID = 128
OUT_DIM = 29
DEFAULT_BLOCK_B = 1024  # batch-tile cap; safe under v5e's 16 MiB scoped-VMEM default


def _round_up(n, m):
    return (n + m - 1) // m * m


def _silu(v):
    # SiLU(x) = x * sigmoid(x);  sigmoid(x) = 0.5 * (1 + tanh(0.5 * x))
    # -> one EUP transcendental (tanh) per element instead of exp + reciprocal.
    return v * (0.5 * jnp.tanh(0.5 * v) + 0.5)


def news_classifier_kernel(x_ref,
                           w1_ref, b1_ref,
                           w2_ref, b2_ref,
                           w3_ref, b3_ref,
                           w4_ref, b4_ref,
                           o_ref):
    # x tile is bf16 (TB, IN_PAD); weights bf16; biases f32; all math f32.
    x = x_ref[...]

    h = jnp.dot(x, w1_ref[...], preferred_element_type=jnp.float32) + b1_ref[...]
    h = _silu(h)

    h = jnp.dot(h.astype(jnp.bfloat16), w2_ref[...],
                preferred_element_type=jnp.float32) + b2_ref[...]
    h = _silu(h)

    h = jnp.dot(h.astype(jnp.bfloat16), w3_ref[...],
                preferred_element_type=jnp.float32) + b3_ref[...]
    h = _silu(h)

    logits = jnp.dot(h.astype(jnp.bfloat16), w4_ref[...],
                     preferred_element_type=jnp.float32) + b4_ref[...]

    # 20 * softmax over last dim (torch.nn.Softmax() on 2-D input -> dim=1)
    m = jnp.max(logits, axis=-1, keepdims=True)
    e = jnp.exp(logits - m)
    s = jnp.sum(e, axis=-1, keepdims=True)
    scale = 20.0 / s                       # exact divide on (TB,1): rows sum to 20
    o_ref[...] = (e * scale).astype(o_ref.dtype)


def prepare_params(params_f32):
    """Weights -> bf16 (in, out); w1 rows zero-padded 312 -> 320; biases f32 (1, out)."""
    prepped = {
        "w1": jnp.pad(params_f32["w1"],
                      ((0, IN_PAD - IN_DIM), (0, 0))).astype(jnp.bfloat16),
        "b1": params_f32["b1"].astype(jnp.float32),
    }
    for i in (2, 3, 4):
        prepped[f"w{i}"] = params_f32[f"w{i}"].astype(jnp.bfloat16)
        prepped[f"b{i}"] = params_f32[f"b{i}"].astype(jnp.float32)
    return prepped


def _pick_tiling(B, block_b):
    """Choose (TB, num_tiles, Bp) so padding stays small and v7x gets >=4 tiles."""
    desired_tiles = max(pl.cdiv(B, block_b), 1)
    # Prefer >= 4 grid steps when the batch allows it: megacore sharding on v7x
    # plus >= 2 steps per core for double-buffering.  Never push TB below 8.
    min_tiles = min(4, pl.cdiv(B, 8))
    num_tiles = max(desired_tiles, min_tiles)
    TB = _round_up(pl.cdiv(B, num_tiles), 8)   # sublane-aligned tile
    num_tiles = pl.cdiv(B, TB)                 # re-derive after rounding
    Bp = num_tiles * TB                        # padding < 8 * num_tiles rows
    return TB, num_tiles, Bp


def news_classifier(x, prepped, *, block_b=DEFAULT_BLOCK_B):
    """x: (B, 312) float32. prepped: output of prepare_params. Returns (B, 29) f32."""
    B = x.shape[0]
    TB, num_tiles, Bp = _pick_tiling(B, block_b)

    # Cast to bf16 (halves x DMA) and zero-pad batch + feature axes.
    xp = jnp.pad(x.astype(jnp.bfloat16), ((0, Bp - B), (0, IN_PAD - IN_DIM)))

    w1, b1 = prepped["w1"], prepped["b1"]
    w2, b2 = prepped["w2"], prepped["b2"]
    w3, b3 = prepped["w3"], prepped["b3"]
    w4, b4 = prepped["w4"], prepped["b4"]

    # Constant index_map -> weights/biases DMA'd once and stay VMEM-resident.
    resident = lambda shape: pl.BlockSpec(shape, lambda i: (0, 0))

    # Advisory cost model for XLA's scheduler (padded-batch counts).
    per_row_macs = IN_PAD * HID + 2 * HID * HID + HID * OUT_DIM
    cost = pl.CostEstimate(
        flops=2 * Bp * per_row_macs,
        transcendentals=Bp * (3 * HID + OUT_DIM),
        bytes_accessed=(Bp * (IN_PAD * 2 + OUT_DIM * 4)       # x in bf16, out f32
                        + per_row_macs * 2                     # bf16 weights
                        + (3 * HID + OUT_DIM) * 4),            # f32 biases
    )

    # Only raise the scoped-VMEM limit if a tile larger than the safe default
    # was explicitly requested (v5e's default scoped limit is 16 MiB).
    vmem_limit = 32 * 1024 * 1024 if block_b > 1024 else None

    out_padded = pl.pallas_call(
        news_classifier_kernel,
        out_shape=jax.ShapeDtypeStruct((Bp, OUT_DIM), jnp.float32),
        grid=(num_tiles,),
        in_specs=[
            pl.BlockSpec((TB, IN_PAD), lambda i: (i, 0)),   # x tile, pipelined
            resident(w1.shape), resident(b1.shape),
            resident(w2.shape), resident(b2.shape),
            resident(w3.shape), resident(b3.shape),
            resident(w4.shape), resident(b4.shape),
        ],
        out_specs=pl.BlockSpec((TB, OUT_DIM), lambda i: (i, 0)),
        compiler_params=pltpu.CompilerParams(
            dimension_semantics=("parallel",),               # megacore on v7x
            vmem_limit_bytes=vmem_limit,
        ),
        cost_estimate=cost,
    )(xp, w1, b1, w2, b2, w3, b3, w4, b4)

    return out_padded[:B]


def init_params(key):
    """Deterministic init mimicking PyTorch's Linear default (U[-1/sqrt(fan_in), +])."""
    dims = [(IN_DIM, HID), (HID, HID), (HID, HID), (HID, OUT_DIM)]
    params = {}
    for i, (fin, fout) in enumerate(dims, start=1):
        key, kw, kb = jax.random.split(key, 3)
        bound = 1.0 / (fin ** 0.5)
        params[f"w{i}"] = jax.random.uniform(
            kw, (fin, fout), jnp.float32, minval=-bound, maxval=bound)
        params[f"b{i}"] = jax.random.uniform(
            kb, (1, fout), jnp.float32, minval=-bound, maxval=bound)
    return params


def reference_forward(x, params):
    """Pure-f32 reference matching the PyTorch module semantics."""
    h = x
    for i in range(1, 4):
        h = h @ params[f"w{i}"] + params[f"b{i}"]
        h = h * jax.nn.sigmoid(h)
    logits = h @ params["w4"] + params["b4"]
    return 20.0 * jax.nn.softmax(logits, axis=-1)


if __name__ == "__main__":
    key = jax.random.PRNGKey(0)
    kx, kp, kx2 = jax.random.split(key, 3)

    params = init_params(kp)
    prepped = prepare_params(params)

    # Small demo batch (single tile).
    B = 8
    x = jax.random.normal(kx, (B, IN_DIM), jnp.float32)
    out = jax.block_until_ready(news_classifier(x, prepped))
    ref = reference_forward(x, params)
    assert out.shape == (B, OUT_DIM)
    assert jnp.allclose(out, ref, atol=2e-2, rtol=2e-2), "mismatch vs reference (B=8)"

    # Multi-tile path with a ragged batch (exercises grid + tail padding +
    # the derived-TB / >=4-tiles-when-possible logic).
    B2 = 40
    x2 = jax.random.normal(kx2, (B2, IN_DIM), jnp.float32)
    out2 = jax.block_until_ready(news_classifier(x2, prepped, block_b=16))
    ref2 = reference_forward(x2, params)
    assert out2.shape == (B2, OUT_DIM)
    assert jnp.allclose(out2, ref2, atol=2e-2, rtol=2e-2), "mismatch vs reference (B=40)"

    print("KERNEL_OK")
</pallas_src>

<mosaic_0001>
module attributes {stable_mosaic.version = 11 : i64} {
  func.func @news_classifier_kernel(%arg0: i32, %arg1: memref<8x320xbf16, #tpu.memory_space<vmem>>, %arg2: memref<320x128xbf16, #tpu.memory_space<vmem>>, %arg3: memref<1x128xf32, #tpu.memory_space<vmem>>, %arg4: memref<128x128xbf16, #tpu.memory_space<vmem>>, %arg5: memref<1x128xf32, #tpu.memory_space<vmem>>, %arg6: memref<128x128xbf16, #tpu.memory_space<vmem>>, %arg7: memref<1x128xf32, #tpu.memory_space<vmem>>, %arg8: memref<128x29xbf16, #tpu.memory_space<vmem>>, %arg9: memref<1x29xf32, #tpu.memory_space<vmem>>, %arg10: memref<8x29xf32, #tpu.memory_space<vmem>>) attributes {dimension_semantics = [#tpu.dimension_semantics<parallel>], iteration_bounds = array<i64: 1>, scalar_prefetch = 0 : i64, scratch_operands = 0 : i64, tpu.core_type = #tpu.core_type<tc>, window_params = [{transform_indices = @transform_0, window_bounds = array<i64: 8, 320>}, {pipeline_mode = #tpu.pipeline_mode<synchronous>, transform_indices = @transform_1, window_bounds = array<i64: 320, 128>}, {pipeline_mode = #tpu.pipeline_mode<synchronous>, transform_indices = @transform_2, window_bounds = array<i64: 1, 128>}, {pipeline_mode = #tpu.pipeline_mode<synchronous>, transform_indices = @transform_3, window_bounds = array<i64: 128, 128>}, {pipeline_mode = #tpu.pipeline_mode<synchronous>, transform_indices = @transform_4, window_bounds = array<i64: 1, 128>}, {pipeline_mode = #tpu.pipeline_mode<synchronous>, transform_indices = @transform_5, window_bounds = array<i64: 128, 128>}, {pipeline_mode = #tpu.pipeline_mode<synchronous>, transform_indices = @transform_6, window_bounds = array<i64: 1, 128>}, {pipeline_mode = #tpu.pipeline_mode<synchronous>, transform_indices = @transform_7, window_bounds = array<i64: 128, 29>}, {pipeline_mode = #tpu.pipeline_mode<synchronous>, transform_indices = @transform_8, window_bounds = array<i64: 1, 29>}, {transform_indices = @transform_9, window_bounds = array<i64: 8, 29>}]} {
    %c0 = arith.constant 0 : index
    %c0_0 = arith.constant 0 : index
    %0 = vector.load %arg1[%c0, %c0_0] : memref<8x320xbf16, #tpu.memory_space<vmem>>, vector<8x320xbf16>
    %c0_1 = arith.constant 0 : index
    %c0_2 = arith.constant 0 : index
    %1 = vector.load %arg2[%c0_1, %c0_2] : memref<320x128xbf16, #tpu.memory_space<vmem>>, vector<320x128xbf16>
    %cst = arith.constant dense<0.000000e+00> : vector<8x128xf32>
    %2 = tpu.matmul %0, %1, %cst {dimension_numbers = #tpu.dot_dimension_numbers<[1], [0], [0], [1], [0, 0, 1, 1], [], []>} : vector<8x320xbf16>, vector<320x128xbf16>, vector<8x128xf32> -> vector<8x128xf32>
    %c0_3 = arith.constant 0 : index
    %c0_4 = arith.constant 0 : index
    %3 = vector.load %arg3[%c0_3, %c0_4] : memref<1x128xf32, #tpu.memory_space<vmem>>, vector<1x128xf32>
    %4 = vector.broadcast %3 : vector<1x128xf32> to vector<8x128xf32>
    %5 = arith.addf %2, %4 : vector<8x128xf32>
    %cst_5 = arith.constant 5.000000e-01 : f32
    %6 = vector.broadcast %cst_5 : f32 to vector<8x128xf32>
    %7 = arith.mulf %6, %5 : vector<8x128xf32>
    %8 = math.tanh %7 : vector<8x128xf32>
    %cst_6 = arith.constant 5.000000e-01 : f32
    %9 = vector.broadcast %cst_6 : f32 to vector<8x128xf32>
    %10 = arith.mulf %9, %8 : vector<8x128xf32>
    %cst_7 = arith.constant 5.000000e-01 : f32
    %11 = vector.broadcast %cst_7 : f32 to vector<8x128xf32>
    %12 = arith.addf %10, %11 : vector<8x128xf32>
    %13 = arith.mulf %5, %12 : vector<8x128xf32>
    %14 = arith.truncf %13 : vector<8x128xf32> to vector<8x128xbf16>
    %c0_8 = arith.constant 0 : index
    %c0_9 = arith.constant 0 : index
    %15 = vector.load %arg4[%c0_8, %c0_9] : memref<128x128xbf16, #tpu.memory_space<vmem>>, vector<128x128xbf16>
    %cst_10 = arith.constant dense<0.000000e+00> : vector<8x128xf32>
    %16 = tpu.matmul %14, %15, %cst_10 {dimension_numbers = #tpu.dot_dimension_numbers<[1], [0], [0], [1], [0, 0, 1, 1], [], []>} : vector<8x128xbf16>, vector<128x128xbf16>, vector<8x128xf32> -> vector<8x128xf32>
    %c0_11 = arith.constant 0 : index
    %c0_12 = arith.constant 0 : index
    %17 = vector.load %arg5[%c0_11, %c0_12] : memref<1x128xf32, #tpu.memory_space<vmem>>, vector<1x128xf32>
    %18 = vector.broadcast %17 : vector<1x128xf32> to vector<8x128xf32>
    %19 = arith.addf %16, %18 : vector<8x128xf32>
    %cst_13 = arith.constant 5.000000e-01 : f32
    %20 = vector.broadcast %cst_13 : f32 to vector<8x128xf32>
    %21 = arith.mulf %20, %19 : vector<8x128xf32>
    %22 = math.tanh %21 : vector<8x128xf32>
    %cst_14 = arith.constant 5.000000e-01 : f32
    %23 = vector.broadcast %cst_14 : f32 to vector<8x128xf32>
    %24 = arith.mulf %23, %22 : vector<8x128xf32>
    %cst_15 = arith.constant 5.000000e-01 : f32
    %25 = vector.broadcast %cst_15 : f32 to vector<8x128xf32>
    %26 = arith.addf %24, %25 : vector<8x128xf32>
    %27 = arith.mulf %19, %26 : vector<8x128xf32>
    %28 = arith.truncf %27 : vector<8x128xf32> to vector<8x128xbf16>
    %c0_16 = arith.constant 0 : index
    %c0_17 = arith.constant 0 : index
    %29 = vector.load %arg6[%c0_16, %c0_17] : memref<128x128xbf16, #tpu.memory_space<vmem>>, vector<128x128xbf16>
    %cst_18 = arith.constant dense<0.000000e+00> : vector<8x128xf32>
    %30 = tpu.matmul %28, %29, %cst_18 {dimension_numbers = #tpu.dot_dimension_numbers<[1], [0], [0], [1], [0, 0, 1, 1], [], []>} : vector<8x128xbf16>, vector<128x128xbf16>, vector<8x128xf32> -> vector<8x128xf32>
    %c0_19 = arith.constant 0 : index
    %c0_20 = arith.constant 0 : index
    %31 = vector.load %arg7[%c0_19, %c0_20] : memref<1x128xf32, #tpu.memory_space<vmem>>, vector<1x128xf32>
    %32 = vector.broadcast %31 : vector<1x128xf32> to vector<8x128xf32>
    %33 = arith.addf %30, %32 : vector<8x128xf32>
    %cst_21 = arith.constant 5.000000e-01 : f32
    %34 = vector.broadcast %cst_21 : f32 to vector<8x128xf32>
    %35 = arith.mulf %34, %33 : vector<8x128xf32>
    %36 = math.tanh %35 : vector<8x128xf32>
    %cst_22 = arith.constant 5.000000e-01 : f32
    %37 = vector.broadcast %cst_22 : f32 to vector<8x128xf32>
    %38 = arith.mulf %37, %36 : vector<8x128xf32>
    %cst_23 = arith.constant 5.000000e-01 : f32
    %39 = vector.broadcast %cst_23 : f32 to vector<8x128xf32>
    %40 = arith.addf %38, %39 : vector<8x128xf32>
    %41 = arith.mulf %33, %40 : vector<8x128xf32>
    %42 = arith.truncf %41 : vector<8x128xf32> to vector<8x128xbf16>
    %c0_24 = arith.constant 0 : index
    %c0_25 = arith.constant 0 : index
    %43 = vector.load %arg8[%c0_24, %c0_25] : memref<128x29xbf16, #tpu.memory_space<vmem>>, vector<128x29xbf16>
    %cst_26 = arith.constant dense<0.000000e+00> : vector<8x29xf32>
    %44 = tpu.matmul %42, %43, %cst_26 {dimension_numbers = #tpu.dot_dimension_numbers<[1], [0], [0], [1], [0, 0, 1, 1], [], []>} : vector<8x128xbf16>, vector<128x29xbf16>, vector<8x29xf32> -> vector<8x29xf32>
    %c0_27 = arith.constant 0 : index
    %c0_28 = arith.constant 0 : index
    %45 = vector.load %arg9[%c0_27, %c0_28] : memref<1x29xf32, #tpu.memory_space<vmem>>, vector<1x29xf32>
    %46 = vector.broadcast %45 : vector<1x29xf32> to vector<8x29xf32>
    %47 = arith.addf %44, %46 : vector<8x29xf32>
    %cst_29 = arith.constant dense<0xFF800000> : vector<8xf32>
    %48 = vector.multi_reduction <maximumf>, %47, %cst_29 [1] : vector<8x29xf32> to vector<8xf32>
    %49 = vector.shape_cast %48 : vector<8xf32> to vector<8x1xf32>
    %50 = vector.broadcast %49 : vector<8x1xf32> to vector<8x29xf32>
    %51 = arith.subf %47, %50 : vector<8x29xf32>
    %52 = math.exp %51 : vector<8x29xf32>
    %cst_30 = arith.constant dense<0.000000e+00> : vector<8xf32>
    %53 = vector.multi_reduction <add>, %52, %cst_30 [1] : vector<8x29xf32> to vector<8xf32>
    %54 = vector.shape_cast %53 : vector<8xf32> to vector<8x1xf32>
    %cst_31 = arith.constant 2.000000e+01 : f32
    %55 = vector.broadcast %cst_31 : f32 to vector<8x1xf32>
    %56 = arith.divf %55, %54 : vector<8x1xf32>
    %57 = vector.broadcast %56 : vector<8x1xf32> to vector<8x29xf32>
    %58 = arith.mulf %52, %57 : vector<8x29xf32>
    %c0_32 = arith.constant 0 : index
    %c0_33 = arith.constant 0 : index
    %59 = vector.load %arg10[%c0_32, %c0_33] : memref<8x29xf32, #tpu.memory_space<vmem>>, vector<8x29xf32>
    tpu.vector_store %arg10[%c0_32, %c0_33], %58 {strides = array<i32>} : memref<8x29xf32, #tpu.memory_space<vmem>>, vector<8x29xf32>,
    return
  }
  func.func @transform_0(%arg0: i32) -> (i32, i32) {
    %c0_i32 = arith.constant 0 : i32
    %c0_i32_0 = arith.constant 0 : i32
    return %arg0, %c0_i32 : i32, i32
  }
  func.func @transform_1(%arg0: i32) -> (i32, i32) {
    %c0_i32 = arith.constant 0 : i32
    %c0_i32_0 = arith.constant 0 : i32
    %c0_i32_1 = arith.constant 0 : i32
    return %c0_i32, %c0_i32_0 : i32, i32
  }
  func.func @transform_2(%arg0: i32) -> (i32, i32) {
    %c0_i32 = arith.constant 0 : i32
    %c0_i32_0 = arith.constant 0 : i32
    %c0_i32_1 = arith.constant 0 : i32
    return %c0_i32, %c0_i32_0 : i32, i32
  }
  func.func @transform_3(%arg0: i32) -> (i32, i32) {
    %c0_i32 = arith.constant 0 : i32
    %c0_i32_0 = arith.constant 0 : i32
    %c0_i32_1 = arith.constant 0 : i32
    return %c0_i32, %c0_i32_0 : i32, i32
  }
  func.func @transform_4(%arg0: i32) -> (i32, i32) {
    %c0_i32 = arith.constant 0 : i32
    %c0_i32_0 = arith.constant 0 : i32
    %c0_i32_1 = arith.constant 0 : i32
    return %c0_i32, %c0_i32_0 : i32, i32
  }
  func.func @transform_5(%arg0: i32) -> (i32, i32) {
    %c0_i32 = arith.constant 0 : i32
    %c0_i32_0 = arith.constant 0 : i32
    %c0_i32_1 = arith.constant 0 : i32
    return %c0_i32, %c0_i32_0 : i32, i32
  }
  func.func @transform_6(%arg0: i32) -> (i32, i32) {
    %c0_i32 = arith.constant 0 : i32
    %c0_i32_0 = arith.constant 0 : i32
    %c0_i32_1 = arith.constant 0 : i32
    return %c0_i32, %c0_i32_0 : i32, i32
  }
  func.func @transform_7(%arg0: i32) -> (i32, i32) {
    %c0_i32 = arith.constant 0 : i32
    %c0_i32_0 = arith.constant 0 : i32
    %c0_i32_1 = arith.constant 0 : i32
    return %c0_i32, %c0_i32_0 : i32, i32
  }
  func.func @transform_8(%arg0: i32) -> (i32, i32) {
    %c0_i32 = arith.constant 0 : i32
    %c0_i32_0 = arith.constant 0 : i32
    %c0_i32_1 = arith.constant 0 : i32
    return %c0_i32, %c0_i32_0 : i32, i32
  }
  func.func @transform_9(%arg0: i32) -> (i32, i32) {
    %c0_i32 = arith.constant 0 : i32
    %c0_i32_0 = arith.constant 0 : i32
    return %arg0, %c0_i32 : i32, i32
  }
}

</mosaic_0001>

<bundles_post_ra>
// kernel: tpu_custom_call.1
= control target key start
LH: loop header
LB: loop body
LE: loop exit
PB: predicated region body
PF: predicated region fallthrough
CT: control target
= control target key end

     0   :  { %14 = vsyncpa [#allocation3], 0  ;;  %s1218_s0 = inlined_call_operand.vmem [shape: bf16[8,320], index: 0, kind: input, shape index: {}]   ;;  %s1219_s1 = inlined_call_operand.hbm [shape: bf16[320,128], index: 1, kind: input, shape index: {}]   ;;  %s1220_s2 = inlined_call_operand.vmem [shape: f32[1,128], index: 2, kind: input, shape index: {}]   ;;  %s1221_s3 = inlined_call_operand.vmem [shape: bf16[128,128], index: 3, kind: input, shape index: {}]   ;;  %s1222_s4 = inlined_call_operand.vmem [shape: f32[1,128], index: 4, kind: input, shape index: {}]   ;;  %s1223_s5 = inlined_call_operand.hbm [shape: bf16[128,128], index: 5, kind: input, shape index: {}]   ;;  %s1224_s6 = inlined_call_operand.vmem [shape: f32[1,128], index: 6, kind: input, shape index: {}]   ;;  %s1225_s7 = inlined_call_operand.vmem [shape: bf16[128,29], index: 7, kind: input, shape index: {}]   ;;  %s1226_s8 = inlined_call_operand.vmem [shape: f32[1,29], index: 8, kind: input, shape index: {}]   ;;  %s1227_s9 = inlined_call_operand.hbm [shape: f32[8,29], index: 9, kind: output, shape index: {}]  }
   0x1   :  { %15 = vsyncpa [#allocation6], 0 }
   0x2   :  { %16 = vsyncpa [#allocation4], 0  ;;  %s1020_s30 = smov [#allocation2]   ;;  %s948_s13 = scalar_lea.hbm %s1219_s1, 2560 }
   0x3   :  { %s24_s10 = sshll.u32 %s1020_s30, 4  ;;  %p949_p0 = scmp.ne.s32.totalorder %s1219_s1, %s948_s13  ;;  %s25_s10 = int_to_ptr.vmem [resolvable:$true] %s24_s10 }
   0x4   :  { %p952_p1 = scmp.lt.u32.totalorder %s948_s13, %s1219_s1 }
   0x6   :  { %p954_p2 = pnand %p952_p1, %p949_p0 }
   0x8   :  { %957 = shalt.err (!%p954_p2)
}
   0x9   :  { %s958_s18 = scalar_lea.vmem %s25_s10, 2560  ;;  %p963_p4 = scmp.lt.s32.totalorder %s25_s10, %s25_s10 }
   0xa   :  { %p959_p3 = scmp.ne.s32.totalorder %s25_s10, %s958_s18  ;;  %p964_p5 = scmp.lt.s32.totalorder %s958_s18, %s958_s18 }
   0xc   :  { %p965_p6 = por %p964_p5, %p963_p4 }
   0xe   :  { %p966_p7 = pnand %p965_p6, %p959_p3 }
  0x10   :  { %969 = shalt.err (!%p966_p7)
}
  0x11   :  { %s1021_s19 = smov 64   ;;  %s1022_s20 = smov 4  }
  0x12   :  { %30 = dma.hbm_to_vmem [thread:$0]  %s1219_s1, 2560, %s25_s10, [#allocation3], %s1021_s19, %s1021_s19, %s1022_s20  }
  0x13   :  { %s1023_s23 = smov [#allocation5]   ;;  %s970_s27 = scalar_lea.hbm %s1223_s5, 1024 }
  0x14   :  { %s42_s24 = sshll.u32 %s1023_s23, 4  ;;  %p971_p8 = scmp.ne.s32.totalorder %s1223_s5, %s970_s27  ;;  %s43_s24 = int_to_ptr.vmem [resolvable:$true] %s42_s24 }
  0x15   :  { %p974_p9 = scmp.lt.u32.totalorder %s970_s27, %s1223_s5 }
  0x17   :  { %p976_p10 = pnand %p974_p9, %p971_p8 }
  0x19   :  { %979 = shalt.err (!%p976_p10)
}
  0x1a   :  { %s980_s12 = scalar_lea.vmem %s43_s24, 1024  ;;  %p985_p12 = scmp.lt.s32.totalorder %s43_s24, %s43_s24 }
  0x1b   :  { %p981_p11 = scmp.ne.s32.totalorder %s43_s24, %s980_s12  ;;  %p986_p13 = scmp.lt.s32.totalorder %s980_s12, %s980_s12 }
  0x1d   :  { %p987_p0 = por %p986_p13, %p985_p12 }
  0x1f   :  { %p988_p1 = pnand %p987_p0, %p981_p11 }
  0x21   :  { %991 = shalt.err (!%p988_p1)
}
  0x22   :  { %48 = dma.hbm_to_vmem [thread:$0]  %s1223_s5, 1024, %s43_s24, [#allocation6], %s1021_s19, %s1021_s19, %s1022_s20  }
  0x23   :  { %1014 = dma.done.wait [#allocation3], 2560  }
  0x24   :  { %1015 = vsyncadd [#allocation3], 4294964736 }
  0x25   :  { %1016 = dma.done.wait [#allocation6], 1024  }
  0x26   :  { %1017 = vsyncadd [#allocation6], 4294966272  ;;  %v1024_v0 = vmov 0.0   ;;  %vm1025_vm0 = vmmov 0   ;;  %v891_v1 = vld [vmem:[#allocation2 + $0x40] sm:$0xff]   ;;  %v893_v3 = vld [vmem:[#allocation2 + $0x48] sm:$0xff]  }
  0x27   :  { %812 = vmatprep.subr.bf16.mxu1 %v1024_v0  ;;  %820 = vmatprep.mubr.msk.bf16.mxu1 %vm1025_vm0, %v1024_v0  ;;  %v892_v2 = vld [vmem:[#allocation2] sm:$0xff]   ;;  %v894_v4 = vld [vmem:[#allocation2 + $0x8] sm:$0xff]   ;;  %v895_v5 = vld [vmem:[#allocation2 + $0x50] sm:$0xff]   ;;  %vm241_vm1 = vcmask 523264   ;;  %vm676_vm2 = vcmask 236544  }
  0x28   :  { %758 = vmatprep.subr.bf16.mxu0 %v891_v1  ;;  %v896_v6 = vld [vmem:[#allocation2 + $0x10] sm:$0xff]   ;;  %v897_v7 = vld [vmem:[#allocation2 + $0x58] sm:$0xff]   ;;  %v901_v8 = vld [vmem:[#allocation2 + $0x80] sm:$0xff]  }
  0x29   :  { %759 = vmatpush3.bf16.msra.mxu0 %v892_v2  ;;  %v898_v9 = vld [vmem:[#allocation2 + $0x18] sm:$0xff]   ;;  %v899_v10 = vld [vmem:[#allocation2 + $0x60] sm:$0xff]   ;;  %813 = vmatpush3.bf16.msra.mxu1 %v901_v8  ;;  %v904_v11 = vld [vmem:[#allocation2 + $0x88] sm:$0xff]  }
  0x2a   :  { %760 = vmatprep.subr.bf16.mxu0 %v893_v3  ;;  %814 = vmatprep.subr.bf16.mxu1 %v1024_v0  ;;  %v900_v12 = vld [vmem:[#allocation2 + $0x20] sm:$0xff]   ;;  %v902_v13 = vld [vmem:[#allocation2 + $0x68] sm:$0xff]   ;;  %v907_v14 = vld [vmem:[#allocation2 + $0x90] sm:$0xff]  }
  0x2b   :  { %v903_v15 = vld [vmem:[#allocation2 + $0x28] sm:$0xff]   ;;  %v62_v16 = vld [vmem:[%s1218_s0] sm:$0xff]  ;;  %v905_v17 = vld [vmem:[#allocation2 + $0x70] sm:$0xff]  }
  0x2c   :  { %v708_v18 = vcombine.high %v62_v16, %v62_v16  ;;  %v912_v19 = vld [vmem:[#allocation2 + $0x98] sm:$0xff]   ;;  %v906_v20 = vld [vmem:[#allocation2 + $0x30] sm:$0xff]   ;;  %v913_v21 = vld [vmem:[%s1218_s0 + $0x8] ss:$0 sps:$4 sm:$0xff]   ;;  %v707_v25 = vcombine.low %v62_v16, %v62_v16 }
  0x2d   :  { %761 = vmatpush3.bf16.msra.mxu0 %v894_v4  ;;  %815 = vmatpush3.bf16.msra.mxu1 %v904_v11  ;;  %v908_v22 = vld [vmem:[#allocation2 + $0x78] sm:$0xff]   ;;  %v914_v23 = vld [vmem:[%s1221_s3] sm:$0xff]   ;;  %v915_v26 = vld [vmem:[%s1221_s3 + $0x8] sm:$0xff]  }
  0x2e   :  { %762 = vmatprep.subr.bf16.mxu0 %v895_v5  ;;  %816 = vmatprep.subr.bf16.mxu1 %v1024_v0  ;;  %v909_v24 = vld [vmem:[#allocation2 + $0x38] sm:$0xff]   ;;  %v916_v27 = vld [vmem:[%s1221_s3 + $0x10] sm:$0xff]   ;;  %v918_v29 = vld [vmem:[%s1221_s3 + $0x20] sm:$0xff]  }
  0x2f   :  { %277 = vmatprep.mubr.bf16.mxu0 %v708_v18  ;;  %v917_v28 = vld [vmem:[%s1221_s3 + $0x18] sm:$0xff]   ;;  %v919_v30 = vld [vmem:[%s1221_s3 + $0x28] sm:$0xff]   ;;  %v920_v31 = vld [vmem:[%s1221_s3 + $0x30] sm:$0xff]  }
  0x30   :  { %v921_v32 = vld [vmem:[%s1221_s3 + $0x38] sm:$0xff]   ;;  %v922_v33 = vld [vmem:[#allocation5] sm:$0xff]   ;;  %v923_v34 = vld [vmem:[#allocation5 + $0x8] sm:$0xff]  }
  0x31   :  { %763 = vmatpush3.bf16.msra.mxu0 %v896_v6  ;;  %817 = vmatpush3.bf16.msra.mxu1 %v907_v14  ;;  %v706_v41 = vld [vmem:[%s1220_s2] ss:$0 sm:$0xff]  ;;  %v924_v53 = vld [vmem:[#allocation5 + $0x10] sm:$0xff]   ;;  %v925_v54 = vld [vmem:[#allocation5 + $0x18] sm:$0xff]  }
  0x32   :  { %764 = vmatprep.subr.bf16.mxu0 %v897_v7  ;;  %818 = vmatprep.subr.bf16.mxu1 %v1024_v0  ;;  %v926_v55 = vld [vmem:[#allocation5 + $0x20] sm:$0xff]   ;;  %v927_v56 = vld [vmem:[#allocation5 + $0x28] sm:$0xff]   ;;  %v928_v57 = vld [vmem:[#allocation5 + $0x30] sm:$0xff]  }
  0x33   :  { %v929_v58 = vld [vmem:[#allocation5 + $0x38] sm:$0xff]   ;;  %v930_v59 = vld [vmem:[%s1225_s7] sm:$0xff]   ;;  %v931_v60 = vld [vmem:[%s1225_s7 + $0x8] sm:$0xff]  }
  0x34   :  { %v731_v61 = vld [vmem:[%s1222_s4] ss:$0 sm:$0xff]  ;;  %v933_v11 = vld [vmem:[%s1225_s7 + $0x18] sm:$0xff]   ;;  %v936_v14 = vld [vmem:[%s1225_s7 + $0x30] sm:$0xff]  }
  0x35   :  { %765 = vmatpush3.bf16.msra.mxu0 %v898_v9  ;;  %819 = vmatpush3.bf16.msra.mxu1 %v912_v19  ;;  %v740_v16 = vld [vmem:[%s1224_s6] ss:$0 sm:$0xff]  ;;  %s1026_s6 = smov [#allocation7]  }
  0x36   :  { %766 = vmatprep.subr.bf16.mxu0 %v899_v10  ;;  %824 = vmatprep.subr.bf16.mxu1 %v1024_v0  ;;  %v932_v10 = vld [vmem:[%s1225_s7 + $0x10] sm:$0xff]  }
  0x38   :  { %821 = vmatmul.mubr.msk.bf16.vlgmr.msra.gmra.mrb[0].mxu1 %vm241_vm1, %v913_v21 }
  0x39   :  { %767 = vmatpush3.bf16.msra.mxu0 %v900_v12  ;;  %825 = vmatpush3.bf16.msra.mxu1 %v914_v23  ;;  %v934_v12 = vld [vmem:[%s1225_s7 + $0x20] sm:$0xff]  }
  0x3a   :  { %768 = vmatprep.subr.bf16.mxu0 %v902_v13  ;;  %826 = vmatprep.subr.bf16.mxu1 %v1024_v0  ;;  %v935_v13 = vld [vmem:[%s1225_s7 + $0x28] sm:$0xff]  }
  0x3b   :  { %840 = vmatprep.mubr.msk.bf16.mxu1 %vm1025_vm0, %v1024_v0 }
  0x3d   :  { %769 = vmatpush3.bf16.msra.mxu0 %v903_v15  ;;  %827 = vmatpush3.bf16.msra.mxu1 %v915_v26  ;;  %v937_v15 = vld [vmem:[%s1225_s7 + $0x38] sm:$0xff]  }
  0x3e   :  { %770 = vmatprep.subr.bf16.mxu0 %v905_v17  ;;  %828 = vmatprep.subr.bf16.mxu1 %v1024_v0 }
  0x41   :  { %771 = vmatpush3.bf16.msra.mxu0 %v906_v20  ;;  %829 = vmatpush3.bf16.msra.mxu1 %v916_v27  ;;  %v749_v27 = vld [vmem:[%s1226_s8] ss:$0 sm:$0xff]  ;;  %s696_s8 = sshll.u32 %s1026_s6, 4  ;;  %s697_s8 = int_to_ptr.vmem [resolvable:$true] %s696_s8 }
  0x42   :  { %772 = vmatprep.subr.bf16.mxu0 %v908_v22  ;;  %830 = vmatprep.subr.bf16.mxu1 %v1024_v0  ;;  %s992_s27 = scalar_lea.vmem %s697_s8, 128  ;;  %p997_p3 = scmp.lt.s32.totalorder %s697_s8, %s697_s8 }
  0x43   :  { %p993_p2 = scmp.ne.s32.totalorder %s697_s8, %s992_s27  ;;  %p998_p4 = scmp.lt.s32.totalorder %s992_s27, %s992_s27 }
  0x45   :  { %773 = vmatpush3.bf16.msra.mxu0 %v909_v24  ;;  %831 = vmatpush3.bf16.msra.mxu1 %v917_v28  ;;  %p999_p5 = por %p998_p4, %p997_p3 }
  0x46   :  { %844 = vmatprep.subr.bf16.mxu0 %v1024_v0  ;;  %832 = vmatprep.subr.bf16.mxu1 %v1024_v0 }
  0x47   :  { %p1000_p6 = pnand %p999_p5, %p993_p2 }
  0x48   :  { %278 = vmatmul.mubr.bf16.vlgmr.msra.gmra.mrb[0].mxu0 %v707_v25 }
  0x49   :  { %860 = vmatprep.mubr.msk.bf16.mxu0 %vm1025_vm0, %v1024_v0  ;;  %833 = vmatpush3.bf16.msra.mxu1 %v918_v29 }
  0x4a   :  { %834 = vmatprep.subr.bf16.mxu1 %v1024_v0  ;;  %845 = vmatpush3.bf16.msra.mxu0 %v922_v33 }
  0x4b   :  { %846 = vmatprep.subr.bf16.mxu0 %v1024_v0 }
  0x4d   :  { %835 = vmatpush3.bf16.msra.mxu1 %v919_v30 }
  0x4e   :  { %836 = vmatprep.subr.bf16.mxu1 %v1024_v0  ;;  %847 = vmatpush3.bf16.msra.mxu0 %v923_v34 }
  0x4f   :  { %848 = vmatprep.subr.bf16.mxu0 %v1024_v0 }
  0x51   :  { %837 = vmatpush3.bf16.msra.mxu1 %v920_v31 }
  0x52   :  { %838 = vmatprep.subr.bf16.mxu1 %v1024_v0  ;;  %849 = vmatpush3.bf16.msra.mxu0 %v924_v53 }
  0x53   :  { %850 = vmatprep.subr.bf16.mxu0 %v1024_v0 }
  0x55   :  { %839 = vmatpush3.bf16.msra.mxu1 %v921_v32 }
  0x56   :  { %864 = vmatprep.subr.bf16.mxu1 %v1024_v0  ;;  %851 = vmatpush3.bf16.msra.mxu0 %v925_v54 }
  0x57   :  { %852 = vmatprep.subr.bf16.mxu0 %v1024_v0 }
  0x5a   :  { %853 = vmatpush3.bf16.msra.mxu0 %v926_v55 }
  0x5b   :  { %854 = vmatprep.subr.bf16.mxu0 %v1024_v0 }
  0x5e   :  { %855 = vmatpush3.bf16.msra.mxu0 %v927_v56 }
  0x5f   :  { %856 = vmatprep.subr.bf16.mxu0 %v1024_v0 }
  0x62   :  { %857 = vmatpush3.bf16.msra.mxu0 %v928_v57 }
  0x63   :  { %858 = vmatprep.subr.bf16.mxu0 %v1024_v0 }
  0x66   :  { %859 = vmatpush3.bf16.msra.mxu0 %v929_v58 }
 0x10b   :  { %v319_v35 = vpop.f32.mrb[0].mxu1 }
 0x10c   :  { %v822_v36 = vpop.f32.mrb[1].mxu1 }
 0x10d   :  { %v322_v37 = vpop.f32.mrb[2].mxu1 }
 0x10e   :  { %v823_v38 = vpop.f32.mrb[3].mxu1 }
 0x11b   :  { %v774_v39 = vpop.f32.mrb[0].mxu0 }
 0x11c   :  { %v775_v40 = vpop.f32.mrb[1].mxu0 }
 0x11d   :  { %v776_v42 = vadd.f32 %v775_v40, %v774_v39  ;;  %v777_v43 = vpop.f32.mrb[2].mxu0 }
 0x11e   :  { %v778_v44 = vpop.f32.mrb[3].mxu0 }
 0x11f   :  { %v280_v45 = vadd.f32 %v776_v42, %v706_v41 }
 0x121   :  { %v320_v46 = vadd.f32 %v319_v35, %v280_v45 }
 0x123   :  { %v325_v47 = vmul.f32 0.5, %v320_v46 }
 0x125   :  { %938 = vtanh.f32 %v325_v47 }
 0x12f   :  { %v939_v48 = vpop.eup %938 }
 0x130   :  { %v327_v49 = vmul.f32 0.5, %v939_v48 }
 0x132   :  { %v328_v50 = vadd.f32 0.5, %v327_v49 }
 0x134   :  { %v329_v51 = vmul.f32 %v328_v50, %v320_v46 }
 0x136   :  { %v330_v52 = vpack.c.bf16 %v329_v51, %v329_v51 }
 0x138   :  { %841 = vmatmul.mubr.bf16.vlgmr.msra.gmra.mrb[4].mxu1 %v330_v52 }
 0x139   :  { %880 = vmatprep.mubr.msk.bf16.mxu1 %vm1025_vm0, %v1024_v0  ;;  %865 = vmatpush3.bf16.msra.mxu1 %v930_v59 }
 0x13a   :  { %866 = vmatprep.subr.bf16.mxu1 %v1024_v0 }
 0x13d   :  { %867 = vmatpush3.bf16.msra.mxu1 %v931_v60 }
 0x13e   :  { %868 = vmatprep.subr.bf16.mxu1 %v1024_v0 }
 0x141   :  { %869 = vmatpush3.bf16.msra.mxu1 %v932_v10 }
 0x142   :  { %870 = vmatprep.subr.bf16.mxu1 %v1024_v0 }
 0x145   :  { %871 = vmatpush3.bf16.msra.mxu1 %v933_v11 }
 0x146   :  { %872 = vmatprep.subr.bf16.mxu1 %v1024_v0 }
 0x149   :  { %873 = vmatpush3.bf16.msra.mxu1 %v934_v12 }
 0x14a   :  { %874 = vmatprep.subr.bf16.mxu1 %v1024_v0 }
 0x14d   :  { %875 = vmatpush3.bf16.msra.mxu1 %v935_v13 }
 0x14e   :  { %876 = vmatprep.subr.bf16.mxu1 %v1024_v0 }
 0x151   :  { %877 = vmatpush3.bf16.msra.mxu1 %v936_v14 }
 0x152   :  { %878 = vmatprep.subr.bf16.mxu1 %v1024_v0 }
 0x155   :  { %879 = vmatpush3.bf16.msra.mxu1 %v937_v15 }
 0x20b   :  { %v436_v62 = vpop.f32.mrb[4].mxu1 }
 0x20c   :  { %v437_v63 = vadd.f32 %v731_v61, %v436_v62  ;;  %v842_v1 = vpop.f32.mrb[5].mxu1 }
 0x20d   :  { %v439_v2 = vpop.f32.mrb[6].mxu1 }
 0x20e   :  { %v442_v3 = vmul.f32 0.5, %v437_v63  ;;  %v843_v4 = vpop.f32.mrb[7].mxu1 }
 0x210   :  { %940 = vtanh.f32 %v442_v3 }
 0x21a   :  { %v941_v5 = vpop.eup %940 }
 0x21b   :  { %v444_v6 = vmul.f32 0.5, %v941_v5 }
 0x21d   :  { %v445_v7 = vadd.f32 0.5, %v444_v6 }
 0x21f   :  { %v446_v8 = vmul.f32 %v445_v7, %v437_v63 }
 0x221   :  { %v447_v9 = vpack.c.bf16 %v446_v8, %v446_v8 }
 0x223   :  { %861 = vmatmul.mubr.bf16.vlgmr.msra.gmra.mrb[4].mxu0 %v447_v9 }
 0x2f6   :  { %v553_v17 = vpop.f32.mrb[4].mxu0 }
 0x2f7   :  { %v554_v18 = vadd.f32 %v740_v16, %v553_v17  ;;  %v862_v19 = vpop.f32.mrb[5].mxu0 }
 0x2f8   :  { %v556_v20 = vpop.f32.mrb[6].mxu0 }
 0x2f9   :  { %v559_v21 = vmul.f32 0.5, %v554_v18  ;;  %v863_v22 = vpop.f32.mrb[7].mxu0 }
 0x2fb   :  { %942 = vtanh.f32 %v559_v21 }
 0x305   :  { %v943_v23 = vpop.eup %942 }
 0x306   :  { %v561_v24 = vmul.f32 0.5, %v943_v23 }
 0x308   :  { %v562_v25 = vadd.f32 0.5, %v561_v24 }
 0x30a   :  { %v563_v0 = vmul.f32 %v562_v25, %v554_v18 }
 0x30c   :  { %v564_v26 = vpack.c.bf16 %v563_v0, %v563_v0 }
 0x30e   :  { %881 = vmatmul.mubr.bf16.vlgmr.msra.gmra.mrb[8].mxu1 %v564_v26 }
 0x3e1   :  { %v670_v28 = vpop.f32.mrb[8].mxu1 }
 0x3e2   :  { %v671_v29 = vadd.f32 %v749_v27, %v670_v28  ;;  %v882_v30 = vpop.f32.mrb[9].mxu1 }
 0x3e3   :  { %v673_v31 = vpop.f32.mrb[10].mxu1 }
 0x3e4   :  { %v883_v32 = vpop.f32.mrb[11].mxu1  ;;  %v677_v33 = vsel %vm676_vm2, %v671_v29, -inf }
 0x3e5   :  { %678 = vmax.xlane.f32.xlu0 %v677_v33 }
 0x472   :  { %v679_v34 = vpop.xlane.xlu0 %678 }
 0x473   :  { %v680_v35 = vsub.f32 %v671_v29, %v679_v34 }
 0x475   :  { %v681_v36 = vmul.f32 1.442695, %v680_v35 }
 0x477   :  { %944 = vpow2.f32 %v681_v36 }
 0x481   :  { %v945_v37 = vpop.eup %944 }
 0x482   :  { %v683_v38 = vsel %vm676_vm2, %v945_v37, 0.0 }
 0x483   :  { %684 = vadd.xlane.f32.xlu0 %v683_v38 }
 0x510   :  { %v685_v39 = vpop.xlane.xlu0 %684 }
 0x511   :  { %946 = vrcp.f32 %v685_v39 }
 0x51b   :  { %v947_v40 = vpop.eup %946 }
 0x51c   :  { %v687_v41 = vmul.f32 20.0, %v947_v40 }
 0x51e   :  { %v688_v42 = vmul.f32 %v945_v37, %v687_v41 }
 0x520   :  { %689 = vst.msk [vmem:[#allocation7] sm:$0xff] %vm676_vm2, %v688_v42 }
 0x521   :  { %1003 = shalt.err (!%p1000_p6)
}
 0x522   :  { %s1004_s30 = scalar_lea.hbm %s1227_s9, 128 }
 0x523   :  { %p1005_p7 = scmp.ne.s32.totalorder %s1227_s9, %s1004_s30  ;;  %p1008_p8 = scmp.lt.u32.totalorder %s1004_s30, %s1227_s9 }
 0x525   :  { %p1010_p9 = pnand %p1008_p8, %p1005_p7 }
 0x527   :  { %1013 = shalt.err (!%p1010_p9)
}
 0x528   :  { %699 = dma.vmem_to_hbm [thread:$0]  %s697_s8, 128, %s1227_s9, [#allocation4]  }
 0x529   :  { %1018 = dma.done.wait [#allocation4], 128  }
 0x52a   :  { %1019 = vsyncadd [#allocation4], 4294967168 }
 0x52b   :  { %703 = vsyncpa [#allocation3], 1 }
 0x52c   :  { %704 = vsyncpa [#allocation6], 1 }
 0x52d   :  { %705 = vsyncpa [#allocation4], 1 }

</bundles_post_ra>
